<compile_context>
chip_gen: v5e
topology: v5e:2x2
jax: 0.10.0
libtpu: 0.0.40
codegen_flags: <defaults>
</compile_context>

<pallas_src>
import functools

import jax
import jax.numpy as jnp
from jax.experimental import pallas as pl
from jax.experimental.pallas import tpu as pltpu


def _round_up(x, m):
    return (x + m - 1) // m * m


def _pad2(a, rows, cols):
    if a.shape == (rows, cols):
        return a
    return jnp.pad(a, ((0, rows - a.shape[0]), (0, cols - a.shape[1])))


def _vmem_capacity_bytes():
    """Physical VMEM per core; conservative 64 MiB fallback (v7x floor)."""
    try:
        info = pltpu.get_tpu_info()
        cap = getattr(info, "vmem_capacity_bytes", None)
        if cap:
            return int(cap)
    except Exception:
        pass
    return 64 * 1024 * 1024


def _ffn_kernel(x_ref, w1_ref, b1_ref, w2_ref, b2_ref, o_ref, *scratch,
                compute_dtype, activation, approximate_gelu):
    # x_ref:  (tm, Hp)   token tile (resident across k)
    # w1_ref: (Hp, ti)   W1 chunk        b1_ref: (1, ti)
    # w2_ref: (ti, Hp)   W2 chunk        b2_ref: (1, Hp)
    # o_ref:  (tm, Hp)   output tile (resident across k)
    # scratch: optional (tm, Hp) f32 accumulator; when absent (f32 output)
    #          we accumulate directly into o_ref.
    acc_ref = scratch[0] if scratch else o_ref
    k = pl.program_id(1)

    @pl.when(k == 0)
    def _():
        acc_ref[...] = jnp.zeros_like(acc_ref)

    x = x_ref[...].astype(compute_dtype)
    w1 = w1_ref[...].astype(compute_dtype)          # no-op if pre-cast
    # First matmul on the MXU, f32 accumulation.
    h = jnp.dot(x, w1, preferred_element_type=jnp.float32)
    h = h + b1_ref[...].astype(jnp.float32)

    if activation == "relu":
        a = jnp.maximum(h, 0.0)
    else:  # gelu; tanh form maps to the EUP (otherwise-idle slot)
        a = jax.nn.gelu(h, approximate=approximate_gelu)

    w2 = w2_ref[...].astype(compute_dtype)           # no-op if pre-cast
    acc_ref[...] += jnp.dot(a.astype(compute_dtype), w2,
                            preferred_element_type=jnp.float32)

    @pl.when(k == pl.num_programs(1) - 1)
    def _():
        o_ref[...] = (acc_ref[...]
                      + b2_ref[...].astype(jnp.float32)).astype(o_ref.dtype)


def feed_forward(x, w1, b1, w2, b2, *, tm=512, ti=1024,
                 compute_dtype=None, activation="gelu",
                 approximate_gelu=True, core_parallel=False):
    """x: [B, S, H]; w1: [H, I]; b1: [I]; w2: [I, H]; b2: [H].

    compute_dtype : MXU input dtype.  Default (None) -> bf16 with f32
        accumulation (production).  Pass jnp.float32 for exact f32 parity.
    tm / ti       : token-row tile and intermediate-dim chunk; auto-shrunk
        to fit the per-generation VMEM budget (queried at trace time).
    core_parallel : set True on v7x to shard token tiles across both TCs.
    """
    B, S, H = x.shape
    I = w1.shape[1]
    M = B * S
    if compute_dtype is None:
        compute_dtype = jnp.bfloat16
    compute_dtype = jnp.dtype(compute_dtype)

    # ---- tile / padding geometry -------------------------------------------
    # Lane dim: 256-align large H (v6e/v7x 256x256 MXU), else 128-align.
    Hp = _round_up(H, 256) if H >= 1024 else _round_up(H, 128)
    # Row alignment follows x.dtype sublane packing (f32:8, bf16:16, 8-bit:32).
    row_align = {4: 8, 2: 16, 1: 32}.get(x.dtype.itemsize, 8)
    tm_eff = min(_round_up(tm, row_align), _round_up(M, row_align))
    ti_eff = min(_round_up(ti, 128), _round_up(I, 128))

    # f32 outputs accumulate directly into o_ref (no scratch accumulator).
    acc_in_out = (x.dtype == jnp.float32)

    xb = x.dtype.itemsize
    wb = min(w1.dtype.itemsize, compute_dtype.itemsize)   # weights pre-cast

    cap = _vmem_capacity_bytes()
    budget = cap * 3 // 4                        # tile-planning budget

    def vmem_est(tm_, ti_):
        return (2 * tm_ * Hp * xb                # x tiles (double-buffered)
                + 2 * tm_ * Hp * xb              # output tiles
                + 2 * Hp * ti_ * wb              # W1 chunks
                + 2 * ti_ * Hp * wb              # W2 chunks
                + 2 * (ti_ + Hp) * 4             # bias tiles
                + (0 if acc_in_out else tm_ * Hp * 4)   # f32 accumulator
                + 5 * tm_ * ti_ * 4)             # h / gelu / cast temporaries

    # Shrink to fit: ti first (keeps arithmetic intensity ~ tm), then tm.
    while vmem_est(tm_eff, ti_eff) > budget:
        if ti_eff > 256:
            ti_eff = max(256, _round_up(ti_eff // 2, 128))
        elif tm_eff > 256:
            tm_eff = max(256, _round_up(tm_eff // 2, row_align))
        elif ti_eff > 128:
            ti_eff = 128
        elif tm_eff > row_align:
            tm_eff = max(row_align, _round_up(tm_eff // 2, row_align))
        else:
            break

    # Prefer a ti that minimizes I padding waste (avoid >~1.5% wasted chunks).
    if I > ti_eff and (_round_up(I, ti_eff) - I) > max(128, I // 64):
        best_t, best_waste = ti_eff, _round_up(I, ti_eff) - I
        t = ti_eff - 128
        while t >= max(128, ti_eff // 2):
            waste = _round_up(I, t) - I
            if waste < best_waste:
                best_t, best_waste = t, waste
            t -= 128
        ti_eff = best_t

    Ip = _round_up(I, ti_eff)
    Mp = _round_up(M, tm_eff)

    # ---- operand prep: cast weights to compute dtype once, zero-pad ---------
    # (zeros are exact: act(0)=0, padded K columns / W2 rows contribute 0)
    w1c = w1.astype(compute_dtype) if w1.dtype != compute_dtype else w1
    w2c = w2.astype(compute_dtype) if w2.dtype != compute_dtype else w2
    x2d = x.reshape(M, H)
    xp = _pad2(x2d, Mp, Hp)
    w1p = _pad2(w1c, Hp, Ip)
    w2p = _pad2(w2c, Ip, Hp)
    b1p = _pad2(b1.reshape(1, I), 1, Ip)
    b2p = _pad2(b2.reshape(1, H), 1, Hp)

    grid = (Mp // tm_eff, Ip // ti_eff)

    vmem_limit = int(min(cap * 9 // 10,
                         max(vmem_est(tm_eff, ti_eff) * 5 // 4,
                             32 * 1024 * 1024)))

    out_bytes = M * H * x.dtype.itemsize
    cost = pl.CostEstimate(
        flops=4 * M * H * I,                        # two M*H*I matmuls
        transcendentals=(0 if activation == "relu" else M * I),
        bytes_accessed=(xp.nbytes + out_bytes + b1p.nbytes + b2p.nbytes
                        + grid[0] * (w1p.nbytes + w2p.nbytes)),
    )

    kernel = functools.partial(_ffn_kernel,
                               compute_dtype=compute_dtype,
                               activation=activation,
                               approximate_gelu=approximate_gelu)

    scratch_shapes = [] if acc_in_out else [pltpu.VMEM((tm_eff, Hp),
                                                       jnp.float32)]
    token_sem = pltpu.CORE_PARALLEL if core_parallel else pltpu.PARALLEL

    out2d = pl.pallas_call(
        kernel,
        out_shape=jax.ShapeDtypeStruct((Mp, Hp), x.dtype),
        grid_spec=pltpu.PrefetchScalarGridSpec(
            num_scalar_prefetch=0,
            grid=grid,                                 # (token tiles, I chunks)
            in_specs=[
                pl.BlockSpec((tm_eff, Hp), lambda i, k: (i, 0)),   # x tile
                pl.BlockSpec((Hp, ti_eff), lambda i, k: (0, k)),   # W1 chunk
                pl.BlockSpec((1, ti_eff), lambda i, k: (0, k)),    # b1 chunk
                pl.BlockSpec((ti_eff, Hp), lambda i, k: (k, 0)),   # W2 chunk
                pl.BlockSpec((1, Hp), lambda i, k: (0, 0)),        # b2
            ],
            out_specs=pl.BlockSpec((tm_eff, Hp), lambda i, k: (i, 0)),
            scratch_shapes=scratch_shapes,
        ),
        compiler_params=pltpu.CompilerParams(
            dimension_semantics=(token_sem, pltpu.ARBITRARY),
            vmem_limit_bytes=vmem_limit,
        ),
        cost_estimate=cost,
    )(xp, w1p, b1p, w2p, b2p)

    return out2d[:M, :H].reshape(B, S, H)


def _reference(x, w1, b1, w2, b2, *, activation="gelu", approximate_gelu=True):
    h = x @ w1 + b1
    if activation == "relu":
        a = jnp.maximum(h, 0.0)
    else:
        a = jax.nn.gelu(h, approximate=approximate_gelu)
    return a @ w2 + b2


if __name__ == "__main__":
    # Small shapes consistent with the module: batch=2, seq=8,
    # hidden_size=32, intermediate_size=64.
    B, S, H, I = 2, 8, 32, 64

    key = jax.random.PRNGKey(0)
    kx, k1, k2, k3, k4 = jax.random.split(key, 5)

    x = jax.random.normal(kx, (B, S, H), dtype=jnp.float32)
    # Deterministic parameter init (nn.Linear-like uniform bounds).
    w1 = jax.random.uniform(k1, (H, I), jnp.float32, -1.0 / H**0.5, 1.0 / H**0.5)
    b1 = jax.random.uniform(k2, (I,), jnp.float32, -1.0 / H**0.5, 1.0 / H**0.5)
    w2 = jax.random.uniform(k3, (I, H), jnp.float32, -1.0 / I**0.5, 1.0 / I**0.5)
    b2 = jax.random.uniform(k4, (H,), jnp.float32, -1.0 / I**0.5, 1.0 / I**0.5)

    ref = _reference(x, w1, b1, w2, b2)

    # f32 parity mode: exact numerics vs the reference.
    out_f32 = feed_forward(x, w1, b1, w2, b2, compute_dtype=jnp.float32)
    jax.block_until_ready(out_f32)
    assert out_f32.shape == (B, S, H)
    assert jnp.allclose(out_f32, ref, atol=1e-5, rtol=1e-5), \
        "f32 parity mismatch vs reference"

    # Production mode: bf16 MXU inputs, f32 accumulation (looser tolerance).
    out_bf16 = feed_forward(x, w1, b1, w2, b2)      # compute_dtype default bf16
    jax.block_until_ready(out_bf16)
    assert out_bf16.shape == (B, S, H)
    assert jnp.allclose(out_bf16, ref, atol=3e-2, rtol=3e-2), \
        "bf16 mismatch vs reference"

    print("KERNEL_OK")
</pallas_src>

<mosaic_0001>
module attributes {stable_mosaic.version = 11 : i64} {
  func.func @_ffn_kernel(%arg0: i32, %arg1: i32, %arg2: memref<16x128xf32, #tpu.memory_space<vmem>>, %arg3: memref<128x128xf32, #tpu.memory_space<vmem>>, %arg4: memref<1x128xf32, #tpu.memory_space<vmem>>, %arg5: memref<128x128xf32, #tpu.memory_space<vmem>>, %arg6: memref<1x128xf32, #tpu.memory_space<vmem>>, %arg7: memref<16x128xf32, #tpu.memory_space<vmem>>) attributes {dimension_semantics = [#tpu.dimension_semantics<parallel>, #tpu.dimension_semantics<arbitrary>], iteration_bounds = array<i64: 1, 1>, scalar_prefetch = 0 : i64, scratch_operands = 0 : i64, tpu.core_type = #tpu.core_type<tc>, window_params = [{transform_indices = @transform_0, window_bounds = array<i64: 16, 128>}, {transform_indices = @transform_1, window_bounds = array<i64: 128, 128>}, {transform_indices = @transform_2, window_bounds = array<i64: 1, 128>}, {transform_indices = @transform_3, window_bounds = array<i64: 128, 128>}, {pipeline_mode = #tpu.pipeline_mode<synchronous>, transform_indices = @transform_4, window_bounds = array<i64: 1, 128>}, {transform_indices = @transform_5, window_bounds = array<i64: 16, 128>}]} {
    %c0_i32 = arith.constant 0 : i32
    %0 = arith.cmpi eq, %arg1, %c0_i32 : i32
    %1 = arith.extui %0 : i1 to i32
    %c0_i32_0 = arith.constant 0 : i32
    %2 = arith.cmpi ne, %1, %c0_i32_0 : i32
    scf.if %2 {
      %cst_19 = arith.constant 0.000000e+00 : f32
      %30 = vector.broadcast %cst_19 : f32 to vector<16x128xf32>
      %c0_20 = arith.constant 0 : index
      %c0_21 = arith.constant 0 : index
      %31 = vector.load %arg7[%c0_20, %c0_21] : memref<16x128xf32, #tpu.memory_space<vmem>>, vector<16x128xf32>
      tpu.vector_store %arg7[%c0_20, %c0_21], %30 {strides = array<i32>} : memref<16x128xf32, #tpu.memory_space<vmem>>, vector<16x128xf32>,
    } else {
    }
    %c0 = arith.constant 0 : index
    %c0_1 = arith.constant 0 : index
    %3 = vector.load %arg2[%c0, %c0_1] : memref<16x128xf32, #tpu.memory_space<vmem>>, vector<16x128xf32>
    %c0_2 = arith.constant 0 : index
    %c0_3 = arith.constant 0 : index
    %4 = vector.load %arg3[%c0_2, %c0_3] : memref<128x128xf32, #tpu.memory_space<vmem>>, vector<128x128xf32>
    %cst = arith.constant dense<0.000000e+00> : vector<16x128xf32>
    %5 = tpu.matmul %3, %4, %cst {dimension_numbers = #tpu.dot_dimension_numbers<[1], [0], [0], [1], [0, 0, 1, 1], [], []>} : vector<16x128xf32>, vector<128x128xf32>, vector<16x128xf32> -> vector<16x128xf32>
    %c0_4 = arith.constant 0 : index
    %c0_5 = arith.constant 0 : index
    %6 = vector.load %arg4[%c0_4, %c0_5] : memref<1x128xf32, #tpu.memory_space<vmem>>, vector<1x128xf32>
    %7 = vector.broadcast %6 : vector<1x128xf32> to vector<16x128xf32>
    %8 = arith.addf %5, %7 : vector<16x128xf32>
    %9 = arith.mulf %8, %8 : vector<16x128xf32>
    %10 = arith.mulf %8, %9 : vector<16x128xf32>
    %cst_6 = arith.constant 4.471500e-02 : f32
    %11 = vector.broadcast %cst_6 : f32 to vector<16x128xf32>
    %12 = arith.mulf %11, %10 : vector<16x128xf32>
    %13 = arith.addf %8, %12 : vector<16x128xf32>
    %cst_7 = arith.constant 0.797884583 : f32
    %14 = vector.broadcast %cst_7 : f32 to vector<16x128xf32>
    %15 = arith.mulf %14, %13 : vector<16x128xf32>
    %16 = math.tanh %15 : vector<16x128xf32>
    %cst_8 = arith.constant 1.000000e+00 : f32
    %17 = vector.broadcast %cst_8 : f32 to vector<16x128xf32>
    %18 = arith.addf %17, %16 : vector<16x128xf32>
    %cst_9 = arith.constant 5.000000e-01 : f32
    %19 = vector.broadcast %cst_9 : f32 to vector<16x128xf32>
    %20 = arith.mulf %19, %18 : vector<16x128xf32>
    %21 = arith.mulf %8, %20 : vector<16x128xf32>
    %c0_10 = arith.constant 0 : index
    %c0_11 = arith.constant 0 : index
    %22 = vector.load %arg5[%c0_10, %c0_11] : memref<128x128xf32, #tpu.memory_space<vmem>>, vector<128x128xf32>
    %c0_12 = arith.constant 0 : index
    %c0_13 = arith.constant 0 : index
    %23 = vector.load %arg7[%c0_12, %c0_13] : memref<16x128xf32, #tpu.memory_space<vmem>>, vector<16x128xf32>
    %cst_14 = arith.constant dense<0.000000e+00> : vector<16x128xf32>
    %24 = tpu.matmul %21, %22, %cst_14 {dimension_numbers = #tpu.dot_dimension_numbers<[1], [0], [0], [1], [0, 0, 1, 1], [], []>} : vector<16x128xf32>, vector<128x128xf32>, vector<16x128xf32> -> vector<16x128xf32>
    %25 = arith.addf %23, %24 : vector<16x128xf32>
    %c0_15 = arith.constant 0 : index
    %c0_16 = arith.constant 0 : index
    %26 = vector.load %arg7[%c0_15, %c0_16] : memref<16x128xf32, #tpu.memory_space<vmem>>, vector<16x128xf32>
    tpu.vector_store %arg7[%c0_15, %c0_16], %25 {strides = array<i32>} : memref<16x128xf32, #tpu.memory_space<vmem>>, vector<16x128xf32>,
    %c0_i32_17 = arith.constant 0 : i32
    %27 = arith.cmpi eq, %arg1, %c0_i32_17 : i32
    %28 = arith.extui %27 : i1 to i32
    %c0_i32_18 = arith.constant 0 : i32
    %29 = arith.cmpi ne, %28, %c0_i32_18 : i32
    scf.if %29 {
      %c0_19 = arith.constant 0 : index
      %c0_20 = arith.constant 0 : index
      %30 = vector.load %arg7[%c0_19, %c0_20] : memref<16x128xf32, #tpu.memory_space<vmem>>, vector<16x128xf32>
      %c0_21 = arith.constant 0 : index
      %c0_22 = arith.constant 0 : index
      %31 = vector.load %arg6[%c0_21, %c0_22] : memref<1x128xf32, #tpu.memory_space<vmem>>, vector<1x128xf32>
      %32 = vector.broadcast %31 : vector<1x128xf32> to vector<16x128xf32>
      %33 = arith.addf %30, %32 : vector<16x128xf32>
      %c0_23 = arith.constant 0 : index
      %c0_24 = arith.constant 0 : index
      %34 = vector.load %arg7[%c0_23, %c0_24] : memref<16x128xf32, #tpu.memory_space<vmem>>, vector<16x128xf32>
      tpu.vector_store %arg7[%c0_23, %c0_24], %33 {strides = array<i32>} : memref<16x128xf32, #tpu.memory_space<vmem>>, vector<16x128xf32>,
    } else {
    }
    return
  }
  func.func @transform_0(%arg0: i32, %arg1: i32) -> (i32, i32) {
    %c0_i32 = arith.constant 0 : i32
    %c0_i32_0 = arith.constant 0 : i32
    return %arg0, %c0_i32 : i32, i32
  }
  func.func @transform_1(%arg0: i32, %arg1: i32) -> (i32, i32) {
    %c0_i32 = arith.constant 0 : i32
    %c0_i32_0 = arith.constant 0 : i32
    return %c0_i32, %arg1 : i32, i32
  }
  func.func @transform_2(%arg0: i32, %arg1: i32) -> (i32, i32) {
    %c0_i32 = arith.constant 0 : i32
    %c0_i32_0 = arith.constant 0 : i32
    return %c0_i32, %arg1 : i32, i32
  }
  func.func @transform_3(%arg0: i32, %arg1: i32) -> (i32, i32) {
    %c0_i32 = arith.constant 0 : i32
    %c0_i32_0 = arith.constant 0 : i32
    return %arg1, %c0_i32 : i32, i32
  }
  func.func @transform_4(%arg0: i32, %arg1: i32) -> (i32, i32) {
    %c0_i32 = arith.constant 0 : i32
    %c0_i32_0 = arith.constant 0 : i32
    %c0_i32_1 = arith.constant 0 : i32
    return %c0_i32, %c0_i32_0 : i32, i32
  }
  func.func @transform_5(%arg0: i32, %arg1: i32) -> (i32, i32) {
    %c0_i32 = arith.constant 0 : i32
    %c0_i32_0 = arith.constant 0 : i32
    return %arg0, %c0_i32 : i32, i32
  }
}

</mosaic_0001>

<bundles_post_ra>
// kernel: tpu_custom_call.1
= control target key start
LH: loop header
LB: loop body
LE: loop exit
PB: predicated region body
PF: predicated region fallthrough
CT: control target
= control target key end

     0   :  { %10 = vsyncpa [#allocation3], 0  ;;  %s428_s0 = inlined_call_operand.hbm [shape: f32[16,128], index: 0, kind: input, shape index: {}]   ;;  %s429_s1 = inlined_call_operand.hbm [shape: f32[128,128], index: 1, kind: input, shape index: {}]   ;;  %s430_s2 = inlined_call_operand.vmem [shape: f32[1,128], index: 2, kind: input, shape index: {}]   ;;  %s431_s3 = inlined_call_operand.hbm [shape: f32[128,128], index: 3, kind: input, shape index: {}]   ;;  %s432_s4 = inlined_call_operand.vmem [shape: f32[1,128], index: 4, kind: input, shape index: {}]   ;;  %s433_s5 = inlined_call_operand.hbm [shape: f32[16,128], index: 5, kind: output, shape index: {}]  }
   0x1   :  { %11 = vsyncpa [#allocation6], 0 }
   0x2   :  { %12 = vsyncpa [#allocation4], 0  ;;  %s30_s20 = sshll.u32 %s429_s1, 4  ;;  %s362_s21 = smov [#allocation5]   ;;  %s31_s20 = int_to_ptr.hbm [resolvable:$true] %s30_s20 }
   0x3   :  { %s32_s22 = sshll.u32 %s362_s21, 4  ;;  %s17_s25 = sshll.u32 %s428_s0, 4  ;;  %s33_s22 = int_to_ptr.vmem [resolvable:$true] %s32_s22  ;;  %s18_s25 = int_to_ptr.hbm [resolvable:$true] %s17_s25 }
   0x4   :  { %s363_s26 = smov 128   ;;  %s364_s27 = smov 8  }
   0x5   :  { %38 = dma.hbm_to_vmem [thread:$0]  %s31_s20, 2048, %s33_s22, [#allocation6], %s363_s26, %s363_s26, %s364_s27  }
   0x6   :  { %s365_s28 = smov [#allocation2]   ;;  %s45_s1 = sshll.u32 %s431_s3, 4  ;;  %s46_s1 = int_to_ptr.hbm [resolvable:$true] %s45_s1 }
   0x7   :  { %s19_s29 = sshll.u32 %s365_s28, 4  ;;  %s366_s0 = smov [#allocation7]   ;;  %s20_s29 = int_to_ptr.vmem [resolvable:$true] %s19_s29 }
   0x8   :  { %25 = dma.hbm_to_vmem [thread:$0]  %s18_s25, 256, %s20_s29, [#allocation3], %s363_s26, %s363_s26, %s364_s27  }
   0x9   :  { %s47_s7 = sshll.u32 %s366_s0, 4  ;;  %s48_s7 = int_to_ptr.vmem [resolvable:$true] %s47_s7 }
   0xa   :  { %53 = dma.hbm_to_vmem [thread:$0]  %s46_s1, 2048, %s48_s7, [#allocation6], %s363_s26, %s363_s26, %s364_s27  }
   0xb   :  { %356 = dma.done.wait [#allocation3], 256  }
   0xc   :  { %357 = vsyncadd [#allocation3], 4294967040 }
   0xd   :  { %358 = dma.done.wait [#allocation6], 4096  }
   0xe   :  { %359 = vsyncadd [#allocation6], 4294963200  ;;  %v91_v0 = vld [vmem:[#allocation5 + $0x78] sm:$0xff]  ;;  %v90_v1 = vld [vmem:[#allocation5 + $0x70] sm:$0xff]  ;;  %s367_s10 = smov [#allocation8]   ;;  %s201_s14 = sshll.u32 %s433_s5, 4  ;;  %s202_s14 = int_to_ptr.hbm [resolvable:$true] %s201_s14 }
   0xf   :  { %96 = vmatpush.msra.mxu0 %v91_v0  ;;  %215 = vmatpush.msra.mxu2 %v91_v0  ;;  %v89_v2 = vld [vmem:[#allocation5 + $0x68] sm:$0xff]  ;;  %v88_v3 = vld [vmem:[#allocation5 + $0x60] sm:$0xff]  ;;  %v87_v4 = vld [vmem:[#allocation5 + $0x58] sm:$0xff]  ;;  %s199_s11 = sshll.u32 %s367_s10, 4  ;;  %s200_s11 = int_to_ptr.vmem [resolvable:$true] %s199_s11 }
  0x10   :  { %v152_v5 = vld [vmem:[#allocation7 + $0x78] sm:$0xff]  ;;  %v151_v6 = vld [vmem:[#allocation7 + $0x70] sm:$0xff]  ;;  %v150_v8 = vld [vmem:[#allocation7 + $0x68] sm:$0xff] }
  0x11   :  { %97 = vmatpush.msra.mxu0 %v90_v1  ;;  %216 = vmatpush.msra.mxu2 %v90_v1  ;;  %v86_v7 = vld [vmem:[#allocation5 + $0x50] sm:$0xff]  ;;  %v85_v9 = vld [vmem:[#allocation5 + $0x48] sm:$0xff]  ;;  %v84_v10 = vld [vmem:[#allocation5 + $0x40] sm:$0xff] }
  0x12   :  { %155 = vmatpush.msra.mxu1 %v152_v5  ;;  %231 = vmatpush.msra.mxu3 %v152_v5  ;;  %v83_v11 = vld [vmem:[#allocation5 + $0x38] sm:$0xff]  ;;  %v82_v12 = vld [vmem:[#allocation5 + $0x30] sm:$0xff]  ;;  %v81_v13 = vld [vmem:[#allocation5 + $0x28] sm:$0xff] }
  0x13   :  { %98 = vmatpush.msra.mxu0 %v89_v2  ;;  %217 = vmatpush.msra.mxu2 %v89_v2  ;;  %v80_v14 = vld [vmem:[#allocation5 + $0x20] sm:$0xff]  ;;  %v79_v15 = vld [vmem:[#allocation5 + $0x18] sm:$0xff]  ;;  %v78_v16 = vld [vmem:[#allocation5 + $0x10] sm:$0xff] }
  0x14   :  { %156 = vmatpush.msra.mxu1 %v151_v6  ;;  %232 = vmatpush.msra.mxu3 %v151_v6  ;;  %v77_v17 = vld [vmem:[#allocation5 + $0x8] sm:$0xff]  ;;  %v76_v18 = vld [vmem:[#allocation5] sm:$0xff]  ;;  %v74_v19 = vld [vmem:[#allocation2] sm:$0xff] }
  0x15   :  { %99 = vmatpush.msra.mxu0 %v88_v3  ;;  %218 = vmatpush.msra.mxu2 %v88_v3  ;;  %v75_v20 = vld [vmem:[#allocation2 + $0x8] sm:$0xff]  ;;  %v149_v21 = vld [vmem:[#allocation7 + $0x60] sm:$0xff]  ;;  %v147_v23 = vld [vmem:[#allocation7 + $0x50] sm:$0xff] }
  0x16   :  { %157 = vmatpush.msra.mxu1 %v150_v8  ;;  %233 = vmatpush.msra.mxu3 %v150_v8  ;;  %v148_v22 = vld [vmem:[#allocation7 + $0x58] sm:$0xff]  ;;  %v146_v24 = vld [vmem:[#allocation7 + $0x48] sm:$0xff]  ;;  %v145_v25 = vld [vmem:[#allocation7 + $0x40] sm:$0xff] }
  0x17   :  { %100 = vmatpush.msra.mxu0 %v87_v4  ;;  %219 = vmatpush.msra.mxu2 %v87_v4  ;;  %v144_v26 = vld [vmem:[#allocation7 + $0x38] sm:$0xff]  ;;  %v143_v27 = vld [vmem:[#allocation7 + $0x30] sm:$0xff]  ;;  %v142_v28 = vld [vmem:[#allocation7 + $0x28] sm:$0xff] }
  0x18   :  { %158 = vmatpush.msra.mxu1 %v149_v21  ;;  %234 = vmatpush.msra.mxu3 %v149_v21  ;;  %v141_v29 = vld [vmem:[#allocation7 + $0x20] sm:$0xff]  ;;  %v140_v30 = vld [vmem:[#allocation7 + $0x18] sm:$0xff]  ;;  %v139_v31 = vld [vmem:[#allocation7 + $0x10] sm:$0xff] }
  0x19   :  { %101 = vmatpush.msra.mxu0 %v86_v7  ;;  %220 = vmatpush.msra.mxu2 %v86_v7  ;;  %v138_v32 = vld [vmem:[#allocation7 + $0x8] sm:$0xff]  ;;  %v137_v33 = vld [vmem:[#allocation7] sm:$0xff]  ;;  %v254_v34 = vld [vmem:[%s430_s2] ss:$0 sm:$0xff] }
  0x1a   :  { %159 = vmatpush.msra.mxu1 %v148_v22  ;;  %235 = vmatpush.msra.mxu3 %v148_v22  ;;  %v255_v57 = vld [vmem:[%s432_s4] ss:$0 sm:$0xff] }
  0x1b   :  { %102 = vmatpush.msra.mxu0 %v85_v9  ;;  %221 = vmatpush.msra.mxu2 %v85_v9 }
  0x1c   :  { %160 = vmatpush.msra.mxu1 %v147_v23  ;;  %236 = vmatpush.msra.mxu3 %v147_v23 }
  0x1d   :  { %103 = vmatpush.msra.mxu0 %v84_v10  ;;  %222 = vmatpush.msra.mxu2 %v84_v10 }
  0x1e   :  { %161 = vmatpush.msra.mxu1 %v146_v24  ;;  %237 = vmatpush.msra.mxu3 %v146_v24 }
  0x1f   :  { %104 = vmatpush.msra.mxu0 %v83_v11  ;;  %223 = vmatpush.msra.mxu2 %v83_v11 }
  0x20   :  { %162 = vmatpush.msra.mxu1 %v145_v25  ;;  %238 = vmatpush.msra.mxu3 %v145_v25 }
  0x21   :  { %105 = vmatpush.msra.mxu0 %v82_v12  ;;  %224 = vmatpush.msra.mxu2 %v82_v12 }
  0x22   :  { %163 = vmatpush.msra.mxu1 %v144_v26  ;;  %239 = vmatpush.msra.mxu3 %v144_v26 }
  0x23   :  { %106 = vmatpush.msra.mxu0 %v81_v13  ;;  %225 = vmatpush.msra.mxu2 %v81_v13 }
  0x24   :  { %164 = vmatpush.msra.mxu1 %v143_v27  ;;  %240 = vmatpush.msra.mxu3 %v143_v27 }
  0x25   :  { %107 = vmatpush.msra.mxu0 %v80_v14  ;;  %226 = vmatpush.msra.mxu2 %v80_v14 }
  0x26   :  { %165 = vmatpush.msra.mxu1 %v142_v28  ;;  %241 = vmatpush.msra.mxu3 %v142_v28 }
  0x27   :  { %108 = vmatpush.msra.mxu0 %v79_v15  ;;  %227 = vmatpush.msra.mxu2 %v79_v15 }
  0x28   :  { %166 = vmatpush.msra.mxu1 %v141_v29  ;;  %242 = vmatpush.msra.mxu3 %v141_v29 }
  0x29   :  { %109 = vmatpush.msra.mxu0 %v78_v16  ;;  %228 = vmatpush.msra.mxu2 %v78_v16 }
  0x2a   :  { %167 = vmatpush.msra.mxu1 %v140_v30  ;;  %243 = vmatpush.msra.mxu3 %v140_v30 }
  0x2b   :  { %110 = vmatpush.msra.mxu0 %v77_v17  ;;  %229 = vmatpush.msra.mxu2 %v77_v17 }
  0x2c   :  { %168 = vmatpush.msra.mxu1 %v139_v31  ;;  %244 = vmatpush.msra.mxu3 %v139_v31 }
  0x2d   :  { %111 = vmatpush.msra.mxu0 %v76_v18  ;;  %230 = vmatpush.msra.mxu2 %v76_v18 }
  0x2e   :  { %112 = vmatmul.f32.vlgmr.msra.gmra.mxu0 %v74_v19  ;;  %115 = vmatmul.f32.vlgmr.msra.gmra.mxu2 %v75_v20 }
  0x2f   :  { %169 = vmatpush.msra.mxu1 %v138_v32  ;;  %245 = vmatpush.msra.mxu3 %v138_v32 }
  0x31   :  { %170 = vmatpush.msra.mxu1 %v137_v33  ;;  %246 = vmatpush.msra.mxu3 %v137_v33 }
  0xab   :  { %v113_v35 = vpop.f32.mrf.mxu0 }
  0xac   :  { %v114_v36 = vadd.f32 %v254_v34, %v113_v35 }
  0xae   :  { %v119_v37 = vmul.f32 %v114_v36, %v114_v36 }
  0xb0   :  { %v121_v38 = vmul.f32 %v119_v37, %v114_v36 }
  0xb1   :  { %v116_v39 = vpop.f32.mrf.mxu2 }
  0xb2   :  { %v117_v40 = vadd.f32 %v254_v34, %v116_v39  ;;  %v123_v41 = vmul.f32 0.044715, %v121_v38 }
  0xb4   :  { %v120_v42 = vmul.f32 %v117_v40, %v117_v40  ;;  %v125_v43 = vadd.f32 %v123_v41, %v114_v36 }
  0xb6   :  { %v122_v44 = vmul.f32 %v120_v42, %v117_v40  ;;  %v127_v45 = vmul.f32 0.7978846, %v125_v43 }
  0xb8   :  { %256 = vtanh.f32 %v127_v45  ;;  %v124_v46 = vmul.f32 0.044715, %v122_v44 }
  0xba   :  { %v126_v47 = vadd.f32 %v124_v46, %v117_v40 }
  0xbc   :  { %v128_v48 = vmul.f32 0.7978846, %v126_v47 }
  0xbe   :  { %v257_v49 = vpop.eup %256  ;;  %258 = vtanh.f32 %v128_v48 }
  0xbf   :  { %v131_v50 = vadd.f32 1.0, %v257_v49 }
  0xc1   :  { %v133_v51 = vmul.f32 0.5, %v131_v50 }
  0xc3   :  { %v135_v52 = vmul.f32 %v133_v51, %v114_v36 }
  0xc4   :  { %v259_v53 = vpop.eup %258 }
  0xc5   :  { %171 = vmatmul.f32.vlgmr.msra.gmra.mxu1 %v135_v52  ;;  %v132_v54 = vadd.f32 1.0, %v259_v53 }
  0xc7   :  { %v134_v55 = vmul.f32 0.5, %v132_v54 }
  0xc9   :  { %v136_v56 = vmul.f32 %v134_v55, %v117_v40 }
  0xcb   :  { %174 = vmatmul.f32.vlgmr.msra.gmra.mxu3 %v136_v56 }
 0x142   :  { %v172_v58 = vpop.f32.mrf.mxu1 }
 0x143   :  { %v191_v59 = vadd.f32 %v255_v57, %v172_v58 }
 0x145   :  { %193 = vst [vmem:[#allocation8] sm:$0xff] %v191_v59 }
 0x14e   :  { %v175_v60 = vpop.f32.mrf.mxu3 }
 0x14f   :  { %v192_v61 = vadd.f32 %v255_v57, %v175_v60 }
 0x151   :  { %194 = vst [vmem:[#allocation8 + $0x8] sm:$0xff] %v192_v61 }
 0x152   :  { %207 = dma.vmem_to_hbm [thread:$0]  %s200_s11, 256, %s202_s14, [#allocation4], %s363_s26, %s363_s26, %s364_s27  }
 0x153   :  { %360 = dma.done.wait [#allocation4], 256  }
 0x154   :  { %361 = vsyncadd [#allocation4], 4294967040 }
 0x155   :  { %212 = vsyncpa [#allocation3], 1 }
 0x156   :  { %213 = vsyncpa [#allocation6], 1 }
 0x157   :  { %214 = vsyncpa [#allocation4], 1 }

</bundles_post_ra>
